<compile_context>
chip_gen: v6e
topology: v6e:2x2x1
jax: 0.10.0
libtpu: 0.0.40
codegen_flags: <defaults>
</compile_context>

<pallas_src>
import math
import jax
import jax.numpy as jnp
from jax.experimental import pallas as pl
from jax.experimental.pallas import tpu as pltpu

# ---- model dims (small, but consistent with the module's forward) ----
BATCH = 2
SEQ = 8
EMBED_DIM = 32
NUM_HEADS = 4
HEAD_DIM = EMBED_DIM // NUM_HEADS
FF_DIM = 4 * EMBED_DIM
EPS = 1e-5
SCALE = 1.0 / math.sqrt(HEAD_DIM)
MXU_DTYPE = jnp.bfloat16  # MXU operand dtype (accumulation stays f32)


def transformer_block_kernel(x_ref,
                             ln1_g, ln1_b,
                             w_qkv, b_qkv, wo, bo,
                             ln2_g, ln2_b,
                             w1, b1, w2, b2,
                             out_ref):
    # x_ref: (S, D) slab for one batch element (one grid step == one batch elem).
    x = x_ref[...]

    def layer_norm(v, g_ref, b_ref):
        mean = jnp.mean(v, axis=-1, keepdims=True)
        var = jnp.mean((v - mean) ** 2, axis=-1, keepdims=True)
        inv = jax.lax.rsqrt(var + EPS)
        return (v - mean) * inv * g_ref[...] + b_ref[...]

    # ---------------- Multi-head self-attention (pre-LN) ----------------
    h = layer_norm(x, ln1_g, ln1_b)

    # Fused QKV projection: one (S, D) x (D, 3D) matmul.  SCALE is already
    # folded into the Q columns (and Q bias) at pack time.
    qkv = jnp.dot(h.astype(MXU_DTYPE), w_qkv[...],
                  preferred_element_type=jnp.float32) + b_qkv[...]   # (S, 3D) f32
    q = qkv[:, :EMBED_DIM]
    k = qkv[:, EMBED_DIM:2 * EMBED_DIM]
    v = qkv[:, 2 * EMBED_DIM:]

    def split_heads(t):
        # (S, H*Dh) -> (H, S, Dh) via static lane slices stacked on a new lead dim.
        parts = [t[:, i * HEAD_DIM:(i + 1) * HEAD_DIM] for i in range(NUM_HEADS)]
        return jnp.concatenate([p[None] for p in parts], axis=0)

    qh = split_heads(q).astype(MXU_DTYPE)   # (H, S, Dh)
    kh = split_heads(k).astype(MXU_DTYPE)
    vh = split_heads(v).astype(MXU_DTYPE)

    # Head-batched scores, contraction on the last dims (no transposes, no mask).
    s = jnp.einsum('hqd,hkd->hqk', qh, kh,
                   preferred_element_type=jnp.float32)               # (H, S, S) f32

    # Softmax (max-subtracted); normalization via EUP approx reciprocal.
    s = s - jnp.max(s, axis=-1, keepdims=True)
    p = jnp.exp(s)
    p = p * pl.reciprocal(jnp.sum(p, axis=-1, keepdims=True), approx=True)

    o = jnp.einsum('hqk,hkd->hqd', p.astype(MXU_DTYPE), vh,
                   preferred_element_type=jnp.float32)               # (H, S, Dh) f32

    # Merge heads back into lanes and run ONE output-projection matmul (K = D).
    o_cat = jnp.concatenate([o[i] for i in range(NUM_HEADS)], axis=-1)  # (S, D)
    attn = jnp.dot(o_cat.astype(MXU_DTYPE), wo[...],
                   preferred_element_type=jnp.float32) + bo[...]
    x1 = x + attn  # residual 1 (f32)

    # ---------------- Feed-forward (pre-LN) ----------------
    h2 = layer_norm(x1, ln2_g, ln2_b)
    f = jnp.dot(h2.astype(MXU_DTYPE), w1[...],
                preferred_element_type=jnp.float32) + b1[...]
    f = jnp.maximum(f, 0.0)  # ReLU
    f = jnp.dot(f.astype(MXU_DTYPE), w2[...],
                preferred_element_type=jnp.float32) + b2[...]
    out_ref[...] = x1 + f    # residual 2


def pack_params(params):
    """Repack per-matrix parameters into the kernel's fused layout.

    - w_qkv: (D, 3D) = [SCALE*wq | wk | wv], bf16 (MXU operand, halves DMA).
    - b_qkv: (1, 3D) = [SCALE*bq | bk | bv], f32 (added post-matmul).
    - wo/w1/w2 cast to bf16; biases and LN params stay f32.
    """
    (ln1_g, ln1_b, wq, bq, wk, bk, wv, bv, wo, bo,
     ln2_g, ln2_b, w1, b1, w2, b2) = params
    w_qkv = jnp.concatenate([wq * SCALE, wk, wv], axis=1).astype(MXU_DTYPE)
    b_qkv = jnp.concatenate([bq * SCALE, bk, bv], axis=1)
    return (ln1_g, ln1_b,
            w_qkv, b_qkv, wo.astype(MXU_DTYPE), bo,
            ln2_g, ln2_b,
            w1.astype(MXU_DTYPE), b1, w2.astype(MXU_DTYPE), b2)


def transformer_block(x, params):
    B, S, D = x.shape
    packed = pack_params(params)
    x_flat = x.reshape(B * S, D)

    def const_spec(a):
        # Full-array block, constant index map -> stays resident across grid steps.
        return pl.BlockSpec(a.shape, lambda b: (0,) * a.ndim)

    in_specs = [pl.BlockSpec((S, D), lambda b: (b, 0))] + [const_spec(a) for a in packed]
    out_spec = pl.BlockSpec((S, D), lambda b: (b, 0))

    out_flat = pl.pallas_call(
        transformer_block_kernel,
        out_shape=jax.ShapeDtypeStruct((B * S, D), jnp.float32),
        grid=(B,),
        in_specs=in_specs,
        out_specs=out_spec,
        compiler_params=pltpu.CompilerParams(
            dimension_semantics=("parallel",)),  # batch elems -> 2 TCs on v7x
    )(x_flat, *packed)
    return out_flat.reshape(B, S, D)


def init_params(key):
    ks = jax.random.split(key, 16)
    std = 0.02
    D, F = EMBED_DIM, FF_DIM
    n = lambda k, shape: std * jax.random.normal(k, shape, jnp.float32)
    params = (
        1.0 + n(ks[0], (1, D)),          # ln1 gamma
        n(ks[1], (1, D)),                # ln1 beta
        n(ks[2], (D, D)), n(ks[3], (1, D)),    # wq, bq
        n(ks[4], (D, D)), n(ks[5], (1, D)),    # wk, bk
        n(ks[6], (D, D)), n(ks[7], (1, D)),    # wv, bv
        n(ks[8], (D, D)), n(ks[9], (1, D)),    # wo, bo
        1.0 + n(ks[10], (1, D)),         # ln2 gamma
        n(ks[11], (1, D)),               # ln2 beta
        n(ks[12], (D, F)), n(ks[13], (1, F)),  # w1, b1
        n(ks[14], (F, D)), n(ks[15], (1, D)),  # w2, b2
    )
    return params


def reference_block(x, params):
    (ln1_g, ln1_b, wq, bq, wk, bk, wv, bv, wo, bo,
     ln2_g, ln2_b, w1, b1, w2, b2) = params

    def ln(v, g, b):
        mean = jnp.mean(v, axis=-1, keepdims=True)
        var = jnp.mean((v - mean) ** 2, axis=-1, keepdims=True)
        return (v - mean) / jnp.sqrt(var + EPS) * g[0] + b[0]

    h = ln(x, ln1_g, ln1_b)
    q = h @ wq + bq[0]
    k = h @ wk + bk[0]
    v = h @ wv + bv[0]
    B, S, D = x.shape
    qh = q.reshape(B, S, NUM_HEADS, HEAD_DIM).transpose(0, 2, 1, 3)
    kh = k.reshape(B, S, NUM_HEADS, HEAD_DIM).transpose(0, 2, 1, 3)
    vh = v.reshape(B, S, NUM_HEADS, HEAD_DIM).transpose(0, 2, 1, 3)
    s = jnp.einsum("bhqd,bhkd->bhqk", qh, kh) * SCALE
    p = jax.nn.softmax(s, axis=-1)
    o = jnp.einsum("bhqk,bhkd->bhqd", p, vh).transpose(0, 2, 1, 3).reshape(B, S, D)
    x1 = x + (o @ wo + bo[0])
    h2 = ln(x1, ln2_g, ln2_b)
    f = jnp.maximum(h2 @ w1 + b1[0], 0.0) @ w2 + b2[0]
    return x1 + f


if __name__ == "__main__":
    key = jax.random.PRNGKey(0)
    kx, kp = jax.random.split(key)
    x = jax.random.normal(kx, (BATCH, SEQ, EMBED_DIM), jnp.float32)
    params = init_params(kp)

    out = transformer_block(x, params)
    out = jax.block_until_ready(out)

    ref = reference_block(x, params)
    assert out.shape == (BATCH, SEQ, EMBED_DIM)
    # bf16 MXU operands + approx-reciprocal softmax -> slightly relaxed tolerance.
    err = jnp.max(jnp.abs(out - ref))
    assert jnp.allclose(out, ref, atol=2e-3, rtol=2e-3), f"max abs err {err}"
    print("KERNEL_OK")
</pallas_src>

<mosaic_0001>
module attributes {stable_mosaic.version = 11 : i64} {
  func.func @transformer_block_kernel(%arg0: i32, %arg1: memref<8x32xf32, #tpu.memory_space<vmem>>, %arg2: memref<1x32xf32, #tpu.memory_space<vmem>>, %arg3: memref<1x32xf32, #tpu.memory_space<vmem>>, %arg4: memref<32x96xbf16, #tpu.memory_space<vmem>>, %arg5: memref<1x96xf32, #tpu.memory_space<vmem>>, %arg6: memref<32x32xbf16, #tpu.memory_space<vmem>>, %arg7: memref<1x32xf32, #tpu.memory_space<vmem>>, %arg8: memref<1x32xf32, #tpu.memory_space<vmem>>, %arg9: memref<1x32xf32, #tpu.memory_space<vmem>>, %arg10: memref<32x128xbf16, #tpu.memory_space<vmem>>, %arg11: memref<1x128xf32, #tpu.memory_space<vmem>>, %arg12: memref<128x32xbf16, #tpu.memory_space<vmem>>, %arg13: memref<1x32xf32, #tpu.memory_space<vmem>>, %arg14: memref<8x32xf32, #tpu.memory_space<vmem>>) attributes {dimension_semantics = [#tpu.dimension_semantics<parallel>], iteration_bounds = array<i64: 2>, scalar_prefetch = 0 : i64, scratch_operands = 0 : i64, tpu.core_type = #tpu.core_type<tc>, window_params = [{transform_indices = @transform_0, window_bounds = array<i64: 8, 32>}, {pipeline_mode = #tpu.pipeline_mode<synchronous>, transform_indices = @transform_1, window_bounds = array<i64: 1, 32>}, {pipeline_mode = #tpu.pipeline_mode<synchronous>, transform_indices = @transform_2, window_bounds = array<i64: 1, 32>}, {pipeline_mode = #tpu.pipeline_mode<synchronous>, transform_indices = @transform_3, window_bounds = array<i64: 32, 96>}, {pipeline_mode = #tpu.pipeline_mode<synchronous>, transform_indices = @transform_4, window_bounds = array<i64: 1, 96>}, {pipeline_mode = #tpu.pipeline_mode<synchronous>, transform_indices = @transform_5, window_bounds = array<i64: 32, 32>}, {pipeline_mode = #tpu.pipeline_mode<synchronous>, transform_indices = @transform_6, window_bounds = array<i64: 1, 32>}, {pipeline_mode = #tpu.pipeline_mode<synchronous>, transform_indices = @transform_7, window_bounds = array<i64: 1, 32>}, {pipeline_mode = #tpu.pipeline_mode<synchronous>, transform_indices = @transform_8, window_bounds = array<i64: 1, 32>}, {pipeline_mode = #tpu.pipeline_mode<synchronous>, transform_indices = @transform_9, window_bounds = array<i64: 32, 128>}, {pipeline_mode = #tpu.pipeline_mode<synchronous>, transform_indices = @transform_10, window_bounds = array<i64: 1, 128>}, {pipeline_mode = #tpu.pipeline_mode<synchronous>, transform_indices = @transform_11, window_bounds = array<i64: 128, 32>}, {pipeline_mode = #tpu.pipeline_mode<synchronous>, transform_indices = @transform_12, window_bounds = array<i64: 1, 32>}, {transform_indices = @transform_13, window_bounds = array<i64: 8, 32>}]} {
    %c0 = arith.constant 0 : index
    %c0_0 = arith.constant 0 : index
    %0 = vector.load %arg1[%c0, %c0_0] : memref<8x32xf32, #tpu.memory_space<vmem>>, vector<8x32xf32>
    %cst = arith.constant dense<0.000000e+00> : vector<8xf32>
    %1 = vector.multi_reduction <add>, %0, %cst [1] : vector<8x32xf32> to vector<8xf32>
    %2 = vector.shape_cast %1 : vector<8xf32> to vector<8x1xf32>
    %cst_1 = arith.constant 3.200000e+01 : f32
    %3 = vector.broadcast %cst_1 : f32 to vector<8x1xf32>
    %4 = arith.divf %2, %3 : vector<8x1xf32>
    %5 = vector.broadcast %4 : vector<8x1xf32> to vector<8x32xf32>
    %6 = arith.subf %0, %5 : vector<8x32xf32>
    %7 = arith.mulf %6, %6 : vector<8x32xf32>
    %cst_2 = arith.constant dense<0.000000e+00> : vector<8xf32>
    %8 = vector.multi_reduction <add>, %7, %cst_2 [1] : vector<8x32xf32> to vector<8xf32>
    %9 = vector.shape_cast %8 : vector<8xf32> to vector<8x1xf32>
    %cst_3 = arith.constant 3.200000e+01 : f32
    %10 = vector.broadcast %cst_3 : f32 to vector<8x1xf32>
    %11 = arith.divf %9, %10 : vector<8x1xf32>
    %cst_4 = arith.constant 9.99999974E-6 : f32
    %12 = vector.broadcast %cst_4 : f32 to vector<8x1xf32>
    %13 = arith.addf %11, %12 : vector<8x1xf32>
    %14 = math.rsqrt %13 : vector<8x1xf32>
    %15 = vector.broadcast %4 : vector<8x1xf32> to vector<8x32xf32>
    %16 = arith.subf %0, %15 : vector<8x32xf32>
    %17 = vector.broadcast %14 : vector<8x1xf32> to vector<8x32xf32>
    %18 = arith.mulf %16, %17 : vector<8x32xf32>
    %c0_5 = arith.constant 0 : index
    %c0_6 = arith.constant 0 : index
    %19 = vector.load %arg2[%c0_5, %c0_6] : memref<1x32xf32, #tpu.memory_space<vmem>>, vector<1x32xf32>
    %20 = vector.broadcast %19 : vector<1x32xf32> to vector<8x32xf32>
    %21 = arith.mulf %18, %20 : vector<8x32xf32>
    %c0_7 = arith.constant 0 : index
    %c0_8 = arith.constant 0 : index
    %22 = vector.load %arg3[%c0_7, %c0_8] : memref<1x32xf32, #tpu.memory_space<vmem>>, vector<1x32xf32>
    %23 = vector.broadcast %22 : vector<1x32xf32> to vector<8x32xf32>
    %24 = arith.addf %21, %23 : vector<8x32xf32>
    %25 = arith.truncf %24 : vector<8x32xf32> to vector<8x32xbf16>
    %c0_9 = arith.constant 0 : index
    %c0_10 = arith.constant 0 : index
    %26 = vector.load %arg4[%c0_9, %c0_10] : memref<32x96xbf16, #tpu.memory_space<vmem>>, vector<32x96xbf16>
    %cst_11 = arith.constant dense<0.000000e+00> : vector<8x96xf32>
    %27 = tpu.matmul %25, %26, %cst_11 {dimension_numbers = #tpu.dot_dimension_numbers<[1], [0], [0], [1], [0, 0, 1, 1], [], []>} : vector<8x32xbf16>, vector<32x96xbf16>, vector<8x96xf32> -> vector<8x96xf32>
    %c0_12 = arith.constant 0 : index
    %c0_13 = arith.constant 0 : index
    %28 = vector.load %arg5[%c0_12, %c0_13] : memref<1x96xf32, #tpu.memory_space<vmem>>, vector<1x96xf32>
    %29 = vector.broadcast %28 : vector<1x96xf32> to vector<8x96xf32>
    %30 = arith.addf %27, %29 : vector<8x96xf32>
    %31 = vector.extract_strided_slice %30 {offsets = [0, 0], sizes = [8, 32], strides = [1, 1]} : vector<8x96xf32> to vector<8x32xf32>
    %32 = vector.extract_strided_slice %30 {offsets = [0, 32], sizes = [8, 32], strides = [1, 1]} : vector<8x96xf32> to vector<8x32xf32>
    %33 = vector.extract_strided_slice %30 {offsets = [0, 64], sizes = [8, 32], strides = [1, 1]} : vector<8x96xf32> to vector<8x32xf32>
    %34 = vector.extract_strided_slice %31 {offsets = [0, 0], sizes = [8, 8], strides = [1, 1]} : vector<8x32xf32> to vector<8x8xf32>
    %35 = vector.extract_strided_slice %31 {offsets = [0, 8], sizes = [8, 8], strides = [1, 1]} : vector<8x32xf32> to vector<8x8xf32>
    %36 = vector.extract_strided_slice %31 {offsets = [0, 16], sizes = [8, 8], strides = [1, 1]} : vector<8x32xf32> to vector<8x8xf32>
    %37 = vector.extract_strided_slice %31 {offsets = [0, 24], sizes = [8, 8], strides = [1, 1]} : vector<8x32xf32> to vector<8x8xf32>
    %38 = vector.shape_cast %34 : vector<8x8xf32> to vector<1x8x8xf32>
    %39 = vector.shape_cast %35 : vector<8x8xf32> to vector<1x8x8xf32>
    %40 = vector.shape_cast %36 : vector<8x8xf32> to vector<1x8x8xf32>
    %41 = vector.shape_cast %37 : vector<8x8xf32> to vector<1x8x8xf32>
    %42 = tpu.concatenate %38, %39, %40, %41 in 0 : vector<1x8x8xf32>, vector<1x8x8xf32>, vector<1x8x8xf32>, vector<1x8x8xf32> -> vector<4x8x8xf32>
    %43 = arith.truncf %42 : vector<4x8x8xf32> to vector<4x8x8xbf16>
    %44 = vector.extract_strided_slice %32 {offsets = [0, 0], sizes = [8, 8], strides = [1, 1]} : vector<8x32xf32> to vector<8x8xf32>
    %45 = vector.extract_strided_slice %32 {offsets = [0, 8], sizes = [8, 8], strides = [1, 1]} : vector<8x32xf32> to vector<8x8xf32>
    %46 = vector.extract_strided_slice %32 {offsets = [0, 16], sizes = [8, 8], strides = [1, 1]} : vector<8x32xf32> to vector<8x8xf32>
    %47 = vector.extract_strided_slice %32 {offsets = [0, 24], sizes = [8, 8], strides = [1, 1]} : vector<8x32xf32> to vector<8x8xf32>
    %48 = vector.shape_cast %44 : vector<8x8xf32> to vector<1x8x8xf32>
    %49 = vector.shape_cast %45 : vector<8x8xf32> to vector<1x8x8xf32>
    %50 = vector.shape_cast %46 : vector<8x8xf32> to vector<1x8x8xf32>
    %51 = vector.shape_cast %47 : vector<8x8xf32> to vector<1x8x8xf32>
    %52 = tpu.concatenate %48, %49, %50, %51 in 0 : vector<1x8x8xf32>, vector<1x8x8xf32>, vector<1x8x8xf32>, vector<1x8x8xf32> -> vector<4x8x8xf32>
    %53 = arith.truncf %52 : vector<4x8x8xf32> to vector<4x8x8xbf16>
    %54 = vector.extract_strided_slice %33 {offsets = [0, 0], sizes = [8, 8], strides = [1, 1]} : vector<8x32xf32> to vector<8x8xf32>
    %55 = vector.extract_strided_slice %33 {offsets = [0, 8], sizes = [8, 8], strides = [1, 1]} : vector<8x32xf32> to vector<8x8xf32>
    %56 = vector.extract_strided_slice %33 {offsets = [0, 16], sizes = [8, 8], strides = [1, 1]} : vector<8x32xf32> to vector<8x8xf32>
    %57 = vector.extract_strided_slice %33 {offsets = [0, 24], sizes = [8, 8], strides = [1, 1]} : vector<8x32xf32> to vector<8x8xf32>
    %58 = vector.shape_cast %54 : vector<8x8xf32> to vector<1x8x8xf32>
    %59 = vector.shape_cast %55 : vector<8x8xf32> to vector<1x8x8xf32>
    %60 = vector.shape_cast %56 : vector<8x8xf32> to vector<1x8x8xf32>
    %61 = vector.shape_cast %57 : vector<8x8xf32> to vector<1x8x8xf32>
    %62 = tpu.concatenate %58, %59, %60, %61 in 0 : vector<1x8x8xf32>, vector<1x8x8xf32>, vector<1x8x8xf32>, vector<1x8x8xf32> -> vector<4x8x8xf32>
    %63 = arith.truncf %62 : vector<4x8x8xf32> to vector<4x8x8xbf16>
    "tpu.trace_start"() <{level = 10 : i32, message = "hqd,hkd->hqk"}> : () -> ()
    %cst_14 = arith.constant dense<0.000000e+00> : vector<4x8x8xf32>
    %64 = tpu.matmul %43, %53, %cst_14 {dimension_numbers = #tpu.dot_dimension_numbers<[2], [2], [1], [1], [0, 0, 0, 1, 1, 1], [0], [0]>} : vector<4x8x8xbf16>, vector<4x8x8xbf16>, vector<4x8x8xf32> -> vector<4x8x8xf32>
    "tpu.trace_stop"() : () -> ()
    %cst_15 = arith.constant dense<0xFF800000> : vector<4x8xf32>
    %65 = vector.multi_reduction <maximumf>, %64, %cst_15 [2] : vector<4x8x8xf32> to vector<4x8xf32>
    %66 = vector.shape_cast %65 : vector<4x8xf32> to vector<4x8x1xf32>
    %67 = vector.broadcast %66 : vector<4x8x1xf32> to vector<4x8x8xf32>
    %68 = arith.subf %64, %67 : vector<4x8x8xf32>
    %69 = math.exp %68 : vector<4x8x8xf32>
    %cst_16 = arith.constant dense<0.000000e+00> : vector<4x8xf32>
    %70 = vector.multi_reduction <add>, %69, %cst_16 [2] : vector<4x8x8xf32> to vector<4x8xf32>
    %71 = vector.shape_cast %70 : vector<4x8xf32> to vector<4x8x1xf32>
    %72 = tpu.reciprocal %71 {approx = true} : vector<4x8x1xf32> -> vector<4x8x1xf32>
    %73 = vector.broadcast %72 : vector<4x8x1xf32> to vector<4x8x8xf32>
    %74 = arith.mulf %69, %73 : vector<4x8x8xf32>
    %75 = arith.truncf %74 : vector<4x8x8xf32> to vector<4x8x8xbf16>
    "tpu.trace_start"() <{level = 10 : i32, message = "hqk,hkd->hqd"}> : () -> ()
    %cst_17 = arith.constant dense<0.000000e+00> : vector<4x8x8xf32>
    %76 = tpu.matmul %75, %63, %cst_17 {dimension_numbers = #tpu.dot_dimension_numbers<[2], [1], [1], [2], [0, 0, 0, 1, 1, 2], [0], [0]>} : vector<4x8x8xbf16>, vector<4x8x8xbf16>, vector<4x8x8xf32> -> vector<4x8x8xf32>
    "tpu.trace_stop"() : () -> ()
    %77 = vector.extract_strided_slice %76 {offsets = [0, 0, 0], sizes = [1, 8, 8], strides = [1, 1, 1]} : vector<4x8x8xf32> to vector<1x8x8xf32>
    %78 = vector.shape_cast %77 : vector<1x8x8xf32> to vector<8x8xf32>
    %79 = vector.extract_strided_slice %76 {offsets = [1, 0, 0], sizes = [1, 8, 8], strides = [1, 1, 1]} : vector<4x8x8xf32> to vector<1x8x8xf32>
    %80 = vector.shape_cast %79 : vector<1x8x8xf32> to vector<8x8xf32>
    %81 = vector.extract_strided_slice %76 {offsets = [2, 0, 0], sizes = [1, 8, 8], strides = [1, 1, 1]} : vector<4x8x8xf32> to vector<1x8x8xf32>
    %82 = vector.shape_cast %81 : vector<1x8x8xf32> to vector<8x8xf32>
    %83 = vector.extract_strided_slice %76 {offsets = [3, 0, 0], sizes = [1, 8, 8], strides = [1, 1, 1]} : vector<4x8x8xf32> to vector<1x8x8xf32>
    %84 = vector.shape_cast %83 : vector<1x8x8xf32> to vector<8x8xf32>
    %85 = tpu.concatenate %78, %80, %82, %84 in 1 : vector<8x8xf32>, vector<8x8xf32>, vector<8x8xf32>, vector<8x8xf32> -> vector<8x32xf32>
    %86 = arith.truncf %85 : vector<8x32xf32> to vector<8x32xbf16>
    %c0_18 = arith.constant 0 : index
    %c0_19 = arith.constant 0 : index
    %87 = vector.load %arg6[%c0_18, %c0_19] : memref<32x32xbf16, #tpu.memory_space<vmem>>, vector<32x32xbf16>
    %cst_20 = arith.constant dense<0.000000e+00> : vector<8x32xf32>
    %88 = tpu.matmul %86, %87, %cst_20 {dimension_numbers = #tpu.dot_dimension_numbers<[1], [0], [0], [1], [0, 0, 1, 1], [], []>} : vector<8x32xbf16>, vector<32x32xbf16>, vector<8x32xf32> -> vector<8x32xf32>
    %c0_21 = arith.constant 0 : index
    %c0_22 = arith.constant 0 : index
    %89 = vector.load %arg7[%c0_21, %c0_22] : memref<1x32xf32, #tpu.memory_space<vmem>>, vector<1x32xf32>
    %90 = vector.broadcast %89 : vector<1x32xf32> to vector<8x32xf32>
    %91 = arith.addf %88, %90 : vector<8x32xf32>
    %92 = arith.addf %0, %91 : vector<8x32xf32>
    %cst_23 = arith.constant dense<0.000000e+00> : vector<8xf32>
    %93 = vector.multi_reduction <add>, %92, %cst_23 [1] : vector<8x32xf32> to vector<8xf32>
    %94 = vector.shape_cast %93 : vector<8xf32> to vector<8x1xf32>
    %cst_24 = arith.constant 3.200000e+01 : f32
    %95 = vector.broadcast %cst_24 : f32 to vector<8x1xf32>
    %96 = arith.divf %94, %95 : vector<8x1xf32>
    %97 = vector.broadcast %96 : vector<8x1xf32> to vector<8x32xf32>
    %98 = arith.subf %92, %97 : vector<8x32xf32>
    %99 = arith.mulf %98, %98 : vector<8x32xf32>
    %cst_25 = arith.constant dense<0.000000e+00> : vector<8xf32>
    %100 = vector.multi_reduction <add>, %99, %cst_25 [1] : vector<8x32xf32> to vector<8xf32>
    %101 = vector.shape_cast %100 : vector<8xf32> to vector<8x1xf32>
    %cst_26 = arith.constant 3.200000e+01 : f32
    %102 = vector.broadcast %cst_26 : f32 to vector<8x1xf32>
    %103 = arith.divf %101, %102 : vector<8x1xf32>
    %cst_27 = arith.constant 9.99999974E-6 : f32
    %104 = vector.broadcast %cst_27 : f32 to vector<8x1xf32>
    %105 = arith.addf %103, %104 : vector<8x1xf32>
    %106 = math.rsqrt %105 : vector<8x1xf32>
    %107 = vector.broadcast %96 : vector<8x1xf32> to vector<8x32xf32>
    %108 = arith.subf %92, %107 : vector<8x32xf32>
    %109 = vector.broadcast %106 : vector<8x1xf32> to vector<8x32xf32>
    %110 = arith.mulf %108, %109 : vector<8x32xf32>
    %c0_28 = arith.constant 0 : index
    %c0_29 = arith.constant 0 : index
    %111 = vector.load %arg8[%c0_28, %c0_29] : memref<1x32xf32, #tpu.memory_space<vmem>>, vector<1x32xf32>
    %112 = vector.broadcast %111 : vector<1x32xf32> to vector<8x32xf32>
    %113 = arith.mulf %110, %112 : vector<8x32xf32>
    %c0_30 = arith.constant 0 : index
    %c0_31 = arith.constant 0 : index
    %114 = vector.load %arg9[%c0_30, %c0_31] : memref<1x32xf32, #tpu.memory_space<vmem>>, vector<1x32xf32>
    %115 = vector.broadcast %114 : vector<1x32xf32> to vector<8x32xf32>
    %116 = arith.addf %113, %115 : vector<8x32xf32>
    %117 = arith.truncf %116 : vector<8x32xf32> to vector<8x32xbf16>
    %c0_32 = arith.constant 0 : index
    %c0_33 = arith.constant 0 : index
    %118 = vector.load %arg10[%c0_32, %c0_33] : memref<32x128xbf16, #tpu.memory_space<vmem>>, vector<32x128xbf16>
    %cst_34 = arith.constant dense<0.000000e+00> : vector<8x128xf32>
    %119 = tpu.matmul %117, %118, %cst_34 {dimension_numbers = #tpu.dot_dimension_numbers<[1], [0], [0], [1], [0, 0, 1, 1], [], []>} : vector<8x32xbf16>, vector<32x128xbf16>, vector<8x128xf32> -> vector<8x128xf32>
    %c0_35 = arith.constant 0 : index
    %c0_36 = arith.constant 0 : index
    %120 = vector.load %arg11[%c0_35, %c0_36] : memref<1x128xf32, #tpu.memory_space<vmem>>, vector<1x128xf32>
    %121 = vector.broadcast %120 : vector<1x128xf32> to vector<8x128xf32>
    %122 = arith.addf %119, %121 : vector<8x128xf32>
    %cst_37 = arith.constant 0.000000e+00 : f32
    %123 = vector.broadcast %cst_37 : f32 to vector<8x128xf32>
    %124 = arith.maximumf %122, %123 : vector<8x128xf32>
    %125 = arith.truncf %124 : vector<8x128xf32> to vector<8x128xbf16>
    %c0_38 = arith.constant 0 : index
    %c0_39 = arith.constant 0 : index
    %126 = vector.load %arg12[%c0_38, %c0_39] : memref<128x32xbf16, #tpu.memory_space<vmem>>, vector<128x32xbf16>
    %cst_40 = arith.constant dense<0.000000e+00> : vector<8x32xf32>
    %127 = tpu.matmul %125, %126, %cst_40 {dimension_numbers = #tpu.dot_dimension_numbers<[1], [0], [0], [1], [0, 0, 1, 1], [], []>} : vector<8x128xbf16>, vector<128x32xbf16>, vector<8x32xf32> -> vector<8x32xf32>
    %c0_41 = arith.constant 0 : index
    %c0_42 = arith.constant 0 : index
    %128 = vector.load %arg13[%c0_41, %c0_42] : memref<1x32xf32, #tpu.memory_space<vmem>>, vector<1x32xf32>
    %129 = vector.broadcast %128 : vector<1x32xf32> to vector<8x32xf32>
    %130 = arith.addf %127, %129 : vector<8x32xf32>
    %131 = arith.addf %92, %130 : vector<8x32xf32>
    %c0_43 = arith.constant 0 : index
    %c0_44 = arith.constant 0 : index
    %132 = vector.load %arg14[%c0_43, %c0_44] : memref<8x32xf32, #tpu.memory_space<vmem>>, vector<8x32xf32>
    tpu.vector_store %arg14[%c0_43, %c0_44], %131 {strides = array<i32>} : memref<8x32xf32, #tpu.memory_space<vmem>>, vector<8x32xf32>,
    return
  }
  func.func @transform_0(%arg0: i32) -> (i32, i32) {
    %c0_i32 = arith.constant 0 : i32
    %c0_i32_0 = arith.constant 0 : i32
    return %arg0, %c0_i32 : i32, i32
  }
  func.func @transform_1(%arg0: i32) -> (i32, i32) {
    %c0_i32 = arith.constant 0 : i32
    %c0_i32_0 = arith.constant 0 : i32
    %c0_i32_1 = arith.constant 0 : i32
    return %c0_i32, %c0_i32_0 : i32, i32
  }
  func.func @transform_2(%arg0: i32) -> (i32, i32) {
    %c0_i32 = arith.constant 0 : i32
    %c0_i32_0 = arith.constant 0 : i32
    %c0_i32_1 = arith.constant 0 : i32
    return %c0_i32, %c0_i32_0 : i32, i32
  }
  func.func @transform_3(%arg0: i32) -> (i32, i32) {
    %c0_i32 = arith.constant 0 : i32
    %c0_i32_0 = arith.constant 0 : i32
    %c0_i32_1 = arith.constant 0 : i32
    return %c0_i32, %c0_i32_0 : i32, i32
  }
  func.func @transform_4(%arg0: i32) -> (i32, i32) {
    %c0_i32 = arith.constant 0 : i32
    %c0_i32_0 = arith.constant 0 : i32
    %c0_i32_1 = arith.constant 0 : i32
    return %c0_i32, %c0_i32_0 : i32, i32
  }
  func.func @transform_5(%arg0: i32) -> (i32, i32) {
    %c0_i32 = arith.constant 0 : i32
    %c0_i32_0 = arith.constant 0 : i32
    %c0_i32_1 = arith.constant 0 : i32
    return %c0_i32, %c0_i32_0 : i32, i32
  }
  func.func @transform_6(%arg0: i32) -> (i32, i32) {
    %c0_i32 = arith.constant 0 : i32
    %c0_i32_0 = arith.constant 0 : i32
    %c0_i32_1 = arith.constant 0 : i32
    return %c0_i32, %c0_i32_0 : i32, i32
  }
  func.func @transform_7(%arg0: i32) -> (i32, i32) {
    %c0_i32 = arith.constant 0 : i32
    %c0_i32_0 = arith.constant 0 : i32
    %c0_i32_1 = arith.constant 0 : i32
    return %c0_i32, %c0_i32_0 : i32, i32
  }
  func.func @transform_8(%arg0: i32) -> (i32, i32) {
    %c0_i32 = arith.constant 0 : i32
    %c0_i32_0 = arith.constant 0 : i32
    %c0_i32_1 = arith.constant 0 : i32
    return %c0_i32, %c0_i32_0 : i32, i32
  }
  func.func @transform_9(%arg0: i32) -> (i32, i32) {
    %c0_i32 = arith.constant 0 : i32
    %c0_i32_0 = arith.constant 0 : i32
    %c0_i32_1 = arith.constant 0 : i32
    return %c0_i32, %c0_i32_0 : i32, i32
  }
  func.func @transform_10(%arg0: i32) -> (i32, i32) {
    %c0_i32 = arith.constant 0 : i32
    %c0_i32_0 = arith.constant 0 : i32
    %c0_i32_1 = arith.constant 0 : i32
    return %c0_i32, %c0_i32_0 : i32, i32
  }
  func.func @transform_11(%arg0: i32) -> (i32, i32) {
    %c0_i32 = arith.constant 0 : i32
    %c0_i32_0 = arith.constant 0 : i32
    %c0_i32_1 = arith.constant 0 : i32
    return %c0_i32, %c0_i32_0 : i32, i32
  }
  func.func @transform_12(%arg0: i32) -> (i32, i32) {
    %c0_i32 = arith.constant 0 : i32
    %c0_i32_0 = arith.constant 0 : i32
    %c0_i32_1 = arith.constant 0 : i32
    return %c0_i32, %c0_i32_0 : i32, i32
  }
  func.func @transform_13(%arg0: i32) -> (i32, i32) {
    %c0_i32 = arith.constant 0 : i32
    %c0_i32_0 = arith.constant 0 : i32
    return %arg0, %c0_i32 : i32, i32
  }
}

</mosaic_0001>

<bundles_post_ra>
// kernel: tpu_custom_call.1
= control target key start
LH: loop header
LB: loop body
LE: loop exit
PB: predicated region body
PF: predicated region fallthrough
CT: control target
= control target key end

     0   :  { %s2025_s0 = inlined_call_operand.vmem [shape: f32[16,32], index: 0, kind: input, shape index: {}]   ;;  %s2026_s1 = inlined_call_operand.vmem [shape: f32[1,32], index: 1, kind: input, shape index: {}]   ;;  %s2027_s2 = inlined_call_operand.vmem [shape: f32[1,32], index: 2, kind: input, shape index: {}]   ;;  %s2028_s3 = inlined_call_operand.vmem [shape: bf16[32,96], index: 3, kind: input, shape index: {}]   ;;  %s2029_s4 = inlined_call_operand.vmem [shape: f32[1,96], index: 4, kind: input, shape index: {}]   ;;  %s2030_s5 = inlined_call_operand.vmem [shape: bf16[32,32], index: 5, kind: input, shape index: {}]   ;;  %s2031_s6 = inlined_call_operand.vmem [shape: f32[1,32], index: 6, kind: input, shape index: {}]   ;;  %s2032_s7 = inlined_call_operand.vmem [shape: f32[1,32], index: 7, kind: input, shape index: {}]   ;;  %s2033_s8 = inlined_call_operand.vmem [shape: f32[1,32], index: 8, kind: input, shape index: {}]   ;;  %s2034_s9 = inlined_call_operand.vmem [shape: bf16[32,128], index: 9, kind: input, shape index: {}]   ;;  %s2035_s10 = inlined_call_operand.vmem [shape: f32[1,128], index: 10, kind: input, shape index: {}]   ;;  %s2036_s11 = inlined_call_operand.vmem [shape: bf16[128,32], index: 11, kind: input, shape index: {}]   ;;  %s2037_s12 = inlined_call_operand.vmem [shape: f32[1,32], index: 12, kind: input, shape index: {}]   ;;  %s2038_s13 = inlined_call_operand.hbm [shape: f32[16,32], index: 13, kind: output, shape index: {}]  }
   0x1   :  { %2039 = sst [smem:[#allocation5_spill]] %s2025_s0 }
   0x2   :  { %2040 = sst [smem:[#allocation6_spill]] %s2026_s1 }
   0x3   :  { %2041 = sst [smem:[#allocation7_spill]] %s2027_s2 }
   0x4   :  { %18 = vsyncpa [#allocation3], 0 }
   0x5   :  { %20 = vsyncpa [#allocation3 + $0x1], 0  ;;  %s1752_s25 = smov 0   ;;  %s1754_s26 = smov 0  }
   0x6   :  { %s1756_s27 = smov 0   ;;  %s1758_s28 = smov 0  }
   0x7 LB: > { %s1773_s29 = sadd.s32 4294967295, %s1669_s28   ;;  %s1357_s30 = sadd.s32 4294967294, %s1669_s28   ;;  %s1669_s28 = sphi %s1758_s28, %s2050_s28   ;;  %s1665_s27 = sphi %s1756_s27, %s2049_s27   ;;  %s1661_s26 = sphi %s1754_s26, %s2048_s26   ;;  %s1657_s25 = sphi %s1752_s25, %s2047_s25  }
   0x8   : > { %s1777_s14 = sadd.s32 1, %s1669_s28   ;;  %s311_s15 = sadd.s32 1, %s1665_s27 }
   0x9   : > { %s308_s16 = ssub.s32 %s1669_s28, %s1777_s14  ;;  %p321_p0 = scmp.ne.s32.totalorder %s1665_s27, %s1661_s26 }
   0xa   : > { %p309_p1 = scmp.eq.s32.totalorder %s308_s16, 0  ;;  %p322_p2 = scmp.eq.s32.totalorder %s1773_s29, 1 }
   0xb   : > { %p327_p3 = scmp.ne.s32.totalorder %s1661_s26, %s1657_s25  ;;  %p328_p4 = scmp.eq.s32.totalorder %s1357_s30, 1 }
   0xc   : > { %s1788_s17 = scalar_select %p309_p1, %s1665_s27, %s311_s15  }
   0xd   : > { %p1790_p5 = por %p322_p2, %p321_p0  ;;  %p1794_p6 = por %p328_p4, %p327_p3 }
   0xe   : > { %p1360_p7 = scmp.ge.s32.totalorder %s1669_s28, 1  ;;  %p389_p8 = scmp.lt.s32.totalorder %s1669_s28, 3 }
  0x10   : > { %p390_p9 = pnand %p1360_p7, %p389_p8 }
  0x11   : > { %p432_p10 = scmp.lt.s32.totalorder (!%p390_p9), %s1773_s29, 1  ;;  %s2044_s0 = sld [smem:[#allocation5_spill]] (!%p390_p9) }
  0x12   : > { %393 = sbr.rel (%p390_p9) target bundleno = 2516 (0x9d4), region = 72  ;;  %s2045_s1 = sld [smem:[#allocation6_spill]] (!%p390_p9) }
  0x13   : > { %s2046_s2 = sld [smem:[#allocation7_spill]] (!%p390_p9)  ;;  %s1673_s16 = smov (!%p390_p9), 104  }
  0x14   : > { %s1676_s22 = smov (!%p390_p9), 96   ;;  %s1677_s23 = smov (!%p390_p9), 64  }
  0x17   : > { %s433_s20 = scalar_select %p432_p10, %s1773_s29, 1  ;;  %vm438_vm0 = vcmask 261120   ;;  %v1575_v7 = vld [vmem:[%s2028_s3 + $0x8] sm:$0xff]   ;;  %v1671_v8 = vmov 0.0   ;;  %vm1672_vm1 = vmmov 0   ;;  %v1576_v9 = vld [vmem:[%s2028_s3] sm:$0xff]  }
  0x18   : > { %1434 = vmatprep.subr.bf16.mxu0 %v1671_v8  ;;  %1438 = vmatprep.mubr.msk.bf16.mxu0 %vm1672_vm1, %v1671_v8  ;;  %v1363_v14 = vld [vmem:[%s2045_s1] ss:$0 sm:$0xff]  ;;  %vm553_vm2 = vcmask 64512   ;;  %vm800_vm3 = vcmask 1043456   ;;  %vm1001_vm4 = vcmask 130048   ;;  %vm1003_vm5 = vcmask 195584  }
  0x19   : > { %s1362_s21 = sshll.u32 %s433_s20, 3  ;;  %1435 = vmatpush3.bf16.msra.mxu0 %v1575_v7  ;;  %1454 = vmatprep.subr.bf16.mxu1 %v1671_v8  ;;  %v1364_v16 = vld [vmem:[%s2046_s2] ss:$0 sm:$0xff]  ;;  %s1674_s20 = smov 120  }
  0x1a   : > { %s435_s24 = scalar_lea.vmem %s2044_s0, %s1362_s21  ;;  %1436 = vmatprep.subr.bf16.mxu0 %v1671_v8  ;;  %1456 = vmatprep.mubr.msk.bf16.mxu1 %vm1672_vm1, %v1671_v8  ;;  %v1365_v20 = vld [vmem:[%s2029_s4] ss:$0 sm:$0xff]  ;;  %s1675_s21 = smov 112  }
  0x1b   : > { %v1805_v0 = vld [vmem:[%s435_s24] sm:$0xff] }
  0x1c   : > { %v439_v1 = vsel %vm438_vm0, %v1805_v0, 0.0 }
  0x1d   : > { %440 = vadd.xlane.f32.xlu0 %v439_v1  ;;  %1437 = vmatpush3.bf16.msra.mxu0 %v1576_v9 }
  0x1e   : > { %1442 = vmatprep.subr.bf16.mxu0 %v1671_v8 }
  0xa6   : > { %v441_v2 = vpop.xlane.xlu0 %440 }
  0xa7   : > { %v443_v3 = vmul.f32 0.03125, %v441_v2 }
  0xa9   : > { %v444_v4 = vsub.f32 %v1805_v0, %v443_v3 }
  0xab   : > { %v445_v5 = vmul.f32 %v444_v4, %v444_v4 }
  0xad   : > { %v446_v6 = vsel %vm438_vm0, %v445_v5, 0.0 }
  0xae   : > { %447 = vadd.xlane.f32.xlu0 %v446_v6 }
 0x137   : > { %v448_v10 = vpop.xlane.xlu0 %447 }
 0x138   : > { %v449_v11 = vmul.f32 0.03125, %v448_v10 }
 0x13a   : > { %v450_v12 = vadd.f32 1e-05, %v449_v11 }
 0x13c   : > { %1589 = vrsqrt.f32 %v450_v12 }
 0x149   : > { %v1590_v13 = vpop.eup %1589 }
 0x14a   : > { %v452_v15 = vmul.f32 %v1590_v13, %v444_v4 }
 0x14c   : > { %v460_v17 = vmul.f32 %v1363_v14, %v452_v15 }
 0x14e   : > { %v468_v18 = vadd.f32 %v1364_v16, %v460_v17 }
 0x150   : > { %v469_v19 = vpack.c.bf16 %v468_v18, %v468_v18 }
 0x152   : > { %1439 = vmatmul.mubr.msk.bf16.vlgmr.msra.gmra.mxu0 %vm438_vm0, %v469_v19 }
 0x153   : > { %1444 = vmatprep.mubr.msk.bf16.mxu0 %vm1672_vm1, %v1671_v8 }
 0x212   : > { %v530_v21 = vpop.f32.mrf.mxu0 }
 0x213   : > { %v531_v22 = vadd.f32 %v1365_v20, %v530_v21 }
 0x214   : > { %v1440_v23 = vpop.f32.mrf.mxu0 }
 0x215   : > { %543 = vrot.lane.b32.xlu0 %v531_v22, %s1673_s16  ;;  %537 = vrot.lane.b32.xlu1 %v531_v22, %s1674_s20  ;;  %v546_v26 = vpack.c.bf16 %v531_v22, %v531_v22  ;;  %s1678_s20 = smov 8   ;;  %s429_s16 = sand.u32 1, %s1661_s26  }
 0x216   : > { %v533_v24 = vpop.f32.mrf.mxu0 }
 0x218   : > { %v1441_v25 = vpop.f32.mrf.mxu0 }
 0x219   : > { %540 = vrot.lane.b32.xlu1 %v531_v22, %s1675_s21  ;;  %s1679_s21 = smov 16  }
 0x21d   : > { %551 = vrot.lane.b32.xlu1 %v546_v26, %s1676_s22 }
 0x287   : > { %v538_v27 = vpop.permute.xlu1 %537  ;;  %v544_v31 = vpop.permute.xlu0 %543 }
 0x288   : > { %v1837_v28 = vpack.c.bf16 %v538_v27, %v538_v27  ;;  %v1843_v33 = vpack.c.bf16 %v544_v31, %v544_v31 }
 0x28a   : > { %601 = vrot.lane.b32.xlu1 %v1837_v28, %s1676_s22 }
 0x28b   : > { %v541_v29 = vpop.permute.xlu1 %540 }
 0x28c   : > { %v1840_v30 = vpack.c.bf16 %v541_v29, %v541_v29 }
 0x28e   : > { %650 = vrot.lane.b32.xlu1 %v1840_v30, %s1676_s22 }
 0x28f   : > { %v552_v32 = vpop.permute.xlu1 %551 }
 0x290   : > { %v558_v34 = vsel %vm553_vm2, %v552_v32, 0 }
 0x291   : > { %1443 = vmatpush3.bf16.xpose.msra.mxu0 %v558_v34 }
 0x292   : > { %699 = vrot.lane.b32.xlu1 %v1843_v33, %s1676_s22  ;;  %1448 = vmatprep.subr.bf16.mxu0 %v1671_v8  ;;  %s1680_s22 = smov 24  }
 0x298   : > { %1445 = vmatmul.mubr.msk.bf16.vlgmr.msra.gmra.mxu0 %vm553_vm2, %v546_v26 }
 0x299   : > { %1450 = vmatprep.mubr.msk.bf16.mxu0 %vm1672_vm1, %v1671_v8 }
 0x2fc   : > { %v602_v35 = vpop.permute.xlu1 %601 }
 0x2fd   : > { %v607_v36 = vsel %vm553_vm2, %v602_v35, 0 }
 0x2fe   : > { %1449 = vmatpush3.bf16.xpose.msra.mxu0 %v607_v36 }
 0x2ff   : > { %1460 = vmatprep.subr.bf16.mxu0 %v1671_v8 }
 0x300   : > { %v651_v37 = vpop.permute.xlu1 %650 }
 0x301   : > { %v656_v38 = vsel %vm553_vm2, %v651_v37, 0 }
 0x302   : > { %1455 = vmatpush3.bf16.xpose.msra.mxu1 %v656_v38 }
 0x303   : > { %1466 = vmatprep.subr.bf16.mxu1 %v1671_v8 }
 0x304   : > { %v700_v39 = vpop.permute.xlu1 %699 }
 0x305   : > { %v705_v40 = vsel %vm553_vm2, %v700_v39, 0  ;;  %1451 = vmatmul.mubr.msk.bf16.vlgmr.msra.gmra.mxu0 %vm553_vm2, %v1837_v28 }
 0x306   : > { %1461 = vmatpush3.bf16.xpose.msra.mxu0 %v705_v40  ;;  %1462 = vmatprep.mubr.msk.bf16.mxu0 %vm1672_vm1, %v1671_v8 }
 0x307   : > { %1472 = vmatprep.subr.bf16.mxu0 %v1671_v8 }
 0x309   : > { %1457 = vmatmul.mubr.msk.bf16.vlgmr.msra.gmra.mxu1 %vm553_vm2, %v1840_v30 }
 0x30a   : > { %1468 = vmatprep.mubr.msk.bf16.mxu1 %vm1672_vm1, %v1671_v8 }
 0x30d   : > { %1463 = vmatmul.mubr.msk.bf16.vlgmr.msra.gmra.mxu0 %vm553_vm2, %v1843_v33 }
 0x30e   : > { %1474 = vmatprep.mubr.msk.bf16.mxu0 %vm1672_vm1, %v1671_v8 }
 0x358   : > { %v594_v41 = vpop.f32.mrf.mxu0 }
 0x359   : > { %v747_v42 = vsel %vm553_vm2, %v594_v41, -inf }
 0x35a   : > { %748 = vmax.xlane.f32.xlu1 %v747_v42  ;;  %v1446_v43 = vpop.f32.mrf.mxu0 }
 0x35c   : > { %v597_v44 = vpop.f32.mrf.mxu0 }
 0x35e   : > { %v1447_v45 = vpop.f32.mrf.mxu0 }
 0x3c5   : > { %v643_v46 = vpop.f32.mrf.mxu0 }
 0x3c6   : > { %v750_v47 = vsel %vm553_vm2, %v643_v46, -inf }
 0x3c7   : > { %751 = vmax.xlane.f32.xlu0 %v750_v47  ;;  %v1452_v48 = vpop.f32.mrf.mxu0  ;;  %v1577_v47 = vld [vmem:[%s2030_s5 + $0x8] sm:$0xff]  }
 0x3c8   : > { %v1578_v48 = vld [vmem:[%s2030_s5] sm:$0xff]  }
 0x3c9   : > { %v646_v49 = vpop.f32.mrf.mxu0  ;;  %v692_v50 = vpop.f32.mrf.mxu1 }
 0x3ca   : > { %v753_v51 = vsel %vm553_vm2, %v692_v50, -inf }
 0x3cb   : > { %v1458_v52 = vpop.f32.mrf.mxu1  ;;  %754 = vmax.xlane.f32.xlu1 %v753_v51  ;;  %v1453_v53 = vpop.f32.mrf.mxu0 }
 0x3cd   : > { %v695_v54 = vpop.f32.mrf.mxu1  ;;  %v741_v55 = vpop.f32.mrf.mxu0 }
 0x3ce   : > { %v756_v56 = vsel %vm553_vm2, %v741_v55, -inf }
 0x3cf   : > { %v1459_v57 = vpop.f32.mrf.mxu1  ;;  %757 = vmax.xlane.f32.xlu0 %v756_v56  ;;  %v1464_v58 = vpop.f32.mrf.mxu0 }
 0x3d1   : > { %v744_v59 = vpop.f32.mrf.mxu0 }
 0x3d3   : > { %v1465_v60 = vpop.f32.mrf.mxu0 }
 0x3dc   : > { %795 = vrot.lane.b32.xlu1 %v546_v26, %s1677_s23 }
 0x3e3   : > { %v749_v61 = vpop.xlane.xlu1 %748 }
 0x3e4   : > { %v759_v62 = vsub.f32 %v594_v41, %v749_v61 }
 0x3e6   : > { %v763_v63 = vmul.f32 1.442695, %v759_v62 }
 0x3e8   : > { %1591 = vpow2.f32 %v763_v63 }
 0x3f5   : > { %v1592_v1 = vpop.eup %1591 }
 0x3f6   : > { %v771_v2 = vsel %vm553_vm2, %v1592_v1, 0.0 }
 0x400   : > { %772 = vadd.xlane.f32.xlu1 %v771_v2 }
 0x450   : > { %v752_v3 = vpop.xlane.xlu0 %751 }
 0x451   : > { %v760_v4 = vsub.f32 %v643_v46, %v752_v3 }
 0x453   : > { %v765_v5 = vmul.f32 1.442695, %v760_v4 }
 0x454   : > { %v755_v6 = vpop.xlane.xlu1 %754 }
 0x455   : > { %1593 = vpow2.f32 %v765_v5  ;;  %v761_v7 = vsub.f32 %v692_v50, %v755_v6  ;;  %v1377_v5 = vld [vmem:[%s2031_s6] ss:$0 sm:$0xff] }
 0x457   : > { %v767_v9 = vmul.f32 1.442695, %v761_v7 }
 0x458   : > { %v796_v10 = vpop.permute.xlu1 %795  ;;  %v758_v11 = vpop.xlane.xlu0 %757 }
 0x459   : > { %1595 = vpow2.f32 %v767_v9  ;;  %v802_v12 = vsel %vm800_vm3, %v796_v10, 0  ;;  %v762_v13 = vsub.f32 %v741_v55, %v758_v11 }
 0x45a   : > { %1467 = vmatpush3.bf16.msra.mxu1 %v802_v12 }
 0x45b   : > { %v769_v14 = vmul.f32 1.442695, %v762_v13  ;;  %1478 = vmatprep.subr.bf16.mxu1 %v1671_v8 }
 0x45d   : > { %1597 = vpow2.f32 %v769_v14 }
 0x462   : > { %v1594_v15 = vpop.eup %1593 }
 0x463   : > { %v774_v16 = vsel %vm553_vm2, %v1594_v15, 0.0 }
 0x464   : > { %775 = vadd.xlane.f32.xlu0 %v774_v16 }
 0x466   : > { %v1596_v17 = vpop.eup %1595 }
 0x467   : > { %v777_v18 = vsel %vm553_vm2, %v1596_v17, 0.0 }
 0x468   : > { %778 = vadd.xlane.f32.xlu1 %v777_v18 }
 0x46a   : > { %v1598_v19 = vpop.eup %1597 }
 0x46b   : > { %v780_v20 = vsel %vm553_vm2, %v1598_v19, 0.0 }
 0x46c   : > { %781 = vadd.xlane.f32.xlu0 %v780_v20  ;;  %v1581_v20 = vld [vmem:[%s2036_s11 + $0x38] sm:$0xff]  }
 0x479   : > { %892 = vrot.lane.b32.xlu1 %v1840_v30, %s1677_s23 }
 0x47d   : > { %940 = vrot.lane.b32.xlu1 %v1843_v33, %s1677_s23 }
 0x482   : > { %844 = vrot.lane.b32.xlu0 %v1837_v28, %s1677_s23  ;;  %s1397_s23 = sshll.u32 %s1773_s29, 7  ;;  %s1285_s29 = scalar_lea.sflag [#allocation3], %s429_s16 }
 0x483   : > { %s1983_s1 = scalar_lea.hbm %s2038_s13, %s1397_s23 }
 0x489   : > { %v773_v21 = vpop.xlane.xlu1 %772 }
 0x48a   : > { %1599 = vrcp.f32 %v773_v21  ;;  %v1582_v21 = vld [vmem:[%s2036_s11 + $0x30] sm:$0xff]  }
 0x497   : > { %v1600_v22 = vpop.eup %1599 }
 0x498   : > { %v787_v23 = vmul.f32 %v1600_v22, %v1592_v1  ;;  %v1583_v22 = vld [vmem:[%s2036_s11 + $0x28] sm:$0xff]  }
 0x49a   : > { %v791_v24 = vpack.c.bf16 %v787_v23, %v787_v23  ;;  %v1584_v23 = vld [vmem:[%s2036_s11 + $0x20] sm:$0xff]  }
 0x49c   : > { %1469 = vmatmul.mubr.msk.bf16.vlgmr.msra.gmra.mxu1 %vm553_vm2, %v791_v24  ;;  %v1585_v24 = vld [vmem:[%s2036_s11 + $0x18] sm:$0xff]  }
 0x49d   : > { %1480 = vmatprep.mubr.msk.bf16.mxu1 %vm1672_vm1, %v1671_v8 }
 0x4ed   : > { %v776_v25 = vpop.xlane.xlu0 %775 }
 0x4ee   : > { %1601 = vrcp.f32 %v776_v25  ;;  %v1586_v25 = vld [vmem:[%s2036_s11 + $0x10] sm:$0xff]  }
 0x4f1   : > { %v779_v26 = vpop.xlane.xlu1 %778 }
 0x4f2   : > { %1603 = vrcp.f32 %v779_v26 }
 0x4f5   : > { %v893_v27 = vpop.permute.xlu1 %892  ;;  %v782_v29 = vpop.xlane.xlu0 %781 }
 0x4f6   : > { %v898_v30 = vsel %vm800_vm3, %v893_v27, 0  ;;  %1605 = vrcp.f32 %v782_v29 }
 0x4f7   : > { %1479 = vmatpush3.bf16.msra.mxu1 %v898_v30 }
 0x4f8   : > { %1490 = vmatprep.subr.bf16.mxu1 %v1671_v8 }
 0x4f9   : > { %v845_v28 = vpop.permute.xlu0 %844  ;;  %v941_v34 = vpop.permute.xlu1 %940 }
 0x4fa   : > { %v850_v31 = vsel %vm800_vm3, %v845_v28, 0  ;;  %v946_v37 = vsel %vm800_vm3, %v941_v34, 0  ;;  %v1381_v28 = vld [vmem:[%s2032_s7] ss:$0 sm:$0xff] }
 0x4fb   : > { %v1602_v32 = vpop.eup %1601  ;;  %1473 = vmatpush3.bf16.msra.mxu0 %v850_v31 }
 0x4fc   : > { %1484 = vmatprep.subr.bf16.mxu0 %v1671_v8  ;;  %v788_v33 = vmul.f32 %v1602_v32, %v1594_v15  ;;  %v1382_v32 = vld [vmem:[%s2033_s8] ss:$0 sm:$0xff] }
 0x4fe   : > { %v792_v35 = vpack.c.bf16 %v788_v33, %v788_v33 }
 0x4ff   : > { %v1604_v36 = vpop.eup %1603 }
 0x500   : > { %1475 = vmatmul.mubr.msk.bf16.vlgmr.msra.gmra.mxu0 %vm553_vm2, %v792_v35  ;;  %v789_v38 = vmul.f32 %v1604_v36, %v1596_v17  ;;  %v1587_v36 = vld [vmem:[%s2036_s11 + $0x8] sm:$0xff]  }
 0x501   : > { %1485 = vmatpush3.bf16.msra.mxu0 %v946_v37  ;;  %1486 = vmatprep.mubr.msk.bf16.mxu0 %vm1672_vm1, %v1671_v8  ;;  %v1588_v37 = vld [vmem:[%s2036_s11] sm:$0xff]  }
 0x502   : > { %v793_v39 = vpack.c.bf16 %v789_v38, %v789_v38  ;;  %1498 = vmatprep.subr.bf16.mxu0 %v1671_v8  ;;  %v1383_v38 = vld [vmem:[%s2035_s10] ss:$0 sm:$0xff] }
 0x503   : > { %v1606_v40 = vpop.eup %1605 }
 0x504   : > { %1481 = vmatmul.mubr.msk.bf16.vlgmr.msra.gmra.mxu1 %vm553_vm2, %v793_v39  ;;  %v790_v41 = vmul.f32 %v1606_v40, %v1598_v19  ;;  %v1579_v19 = vld [vmem:[%s2034_s9 + $0x8] sm:$0xff]  }
 0x505   : > { %1494 = vmatprep.mubr.msk.bf16.mxu1 %vm1672_vm1, %v1671_v8  ;;  %1491 = vmatpush3.bf16.msra.mxu1 %v1577_v47 }
 0x506   : > { %v794_v42 = vpack.c.bf16 %v790_v41, %v790_v41  ;;  %1492 = vmatprep.subr.bf16.mxu1 %v1671_v8 }
 0x508   : > { %1487 = vmatmul.mubr.msk.bf16.vlgmr.msra.gmra.mxu0 %vm553_vm2, %v794_v42 }
 0x509   : > { %1502 = vmatprep.mubr.msk.bf16.mxu0 %vm1672_vm1, %v1671_v8  ;;  %1493 = vmatpush3.bf16.msra.mxu1 %v1578_v48 }
 0x50a   : > { %1506 = vmatprep.subr.bf16.mxu1 %v1671_v8  ;;  %1499 = vmatpush3.bf16.msra.mxu0 %v1579_v19 }
 0x50b   : > { %1500 = vmatprep.subr.bf16.mxu0 %v1671_v8 }
 0x55c   : > { %v838_v43 = vpop.f32.mrf.mxu1 }
 0x55e   : > { %v1470_v44 = vpop.f32.mrf.mxu1 }
 0x560   : > { %v841_v45 = vpop.f32.mrf.mxu1 }
 0x562   : > { %v1471_v46 = vpop.f32.mrf.mxu1 }
 0x5c0   : > { %v886_v49 = vpop.f32.mrf.mxu0 }
 0x5c1   : > { %989 = vrot.lane.b32.xlu0 %v886_v49, %s1678_s20  ;;  %s1361_s20 = sshll.u32 %s429_s16, 3 }
 0x5c2   : > { %v1476_v50 = vpop.f32.mrf.mxu0  ;;  %s431_s24 = scalar_lea.vmem [#allocation2], %s1361_s20 }
 0x5c3   : > { %s1298_s30 = sshll.u32 %s431_s24, 4  ;;  %s1985_s30 = int_to_ptr.vmem [resolvable:$true] %s1298_s30 }
 0x5c4   : > { %v889_v51 = vpop.f32.mrf.mxu0  ;;  %v934_v52 = vpop.f32.mrf.mxu1  ;;  %s1609_s20 = scalar_lea.vmem %s1985_s30, 128 }
 0x5c5   : > { %993 = vrot.lane.b32.xlu1 %v934_v52, %s1679_s21  ;;  %p1610_p11 = scmp.ne.s32.totalorder %s1985_s30, %s1609_s20  ;;  %s1681_s21 = smov [#allocation2]  }
 0x5c6   : > { %v1477_v53 = vpop.f32.mrf.mxu0  ;;  %v1482_v54 = vpop.f32.mrf.mxu1 }
 0x5c7   : > { %p1611_p12 = pnand %p1610_p11, %p1790_p5 }
 0x5c8   : > { %v937_v55 = vpop.f32.mrf.mxu1  ;;  %v982_v56 = vpop.f32.mrf.mxu0 }
 0x5c9   : > { %997 = vrot.lane.b32.xlu0 %v982_v56, %s1680_s22  ;;  %p1612_p13 = pneg %p1611_p12  ;;  %s1613_s22 = sshll.u32 %s1681_s21, 4  ;;  %s1614_s22 = int_to_ptr.vmem [resolvable:$false] %s1613_s22 }
 0x5ca   : > { %v1483_v57 = vpop.f32.mrf.mxu1  ;;  %v1488_v58 = vpop.f32.mrf.mxu0  ;;  %s1615_s0 = scalar_lea.vmem %s1614_s22, 256  ;;  %p1616_p0 = scmp.lt.s32.totalorder %s1985_s30, %s1614_s22 }
 0x5cb   : > { %p1617_p1 = scmp.lt.s32.totalorder %s1615_s0, %s1609_s20 }
 0x5cc   : > { %v985_v59 = vpop.f32.mrf.mxu0 }
 0x5cd   : > { %p1618_p2 = por %p1617_p1, %p1616_p0 }
 0x5ce   : > { %v1489_v60 = vpop.f32.mrf.mxu0 }
 0x5cf   : > { %p1619_p3 = pnand %p1618_p2, %p1612_p13 }
 0x633   : > { %v990_v61 = vpop.permute.xlu0 %989 }
 0x634   : > { %v1000_v63 = vsel %vm553_vm2, %v838_v43, %v990_v61 }
 0x637   : > { %v994_v62 = vpop.permute.xlu1 %993 }
 0x638   : > { %v1002_v1 = vsel %vm1001_vm4, %v1000_v63, %v994_v62 }
 0x63b   : > { %v998_v2 = vpop.permute.xlu0 %997 }
 0x63c   : > { %v1004_v3 = vsel %vm1003_vm5, %v1002_v1, %v998_v2 }
 0x63d   : > { %v1005_v4 = vpack.c.bf16 %v1004_v3, %v1004_v3 }
 0x63f   : > { %1495 = vmatmul.mubr.msk.bf16.vlgmr.msra.gmra.mxu1 %vm438_vm0, %v1005_v4 }
 0x640   : > { %1522 = vmatprep.mubr.msk.bf16.mxu1 %vm1672_vm1, %v1671_v8  ;;  %1507 = vmatpush3.bf16.msra.mxu1 %v1581_v20 }
 0x641   : > { %1508 = vmatprep.subr.bf16.mxu1 %v1671_v8 }
 0x644   : > { %1509 = vmatpush3.bf16.msra.mxu1 %v1582_v21 }
 0x645   : > { %1510 = vmatprep.subr.bf16.mxu1 %v1671_v8 }
 0x648   : > { %1511 = vmatpush3.bf16.msra.mxu1 %v1583_v22 }
 0x649   : > { %1512 = vmatprep.subr.bf16.mxu1 %v1671_v8 }
 0x64c   : > { %1513 = vmatpush3.bf16.msra.mxu1 %v1584_v23 }
 0x64d   : > { %1514 = vmatprep.subr.bf16.mxu1 %v1671_v8 }
 0x650   : > { %1515 = vmatpush3.bf16.msra.mxu1 %v1585_v24 }
 0x651   : > { %1516 = vmatprep.subr.bf16.mxu1 %v1671_v8 }
 0x654   : > { %1517 = vmatpush3.bf16.msra.mxu1 %v1586_v25 }
 0x655   : > { %1518 = vmatprep.subr.bf16.mxu1 %v1671_v8 }
 0x658   : > { %1519 = vmatpush3.bf16.msra.mxu1 %v1587_v36 }
 0x659   : > { %1520 = vmatprep.subr.bf16.mxu1 %v1671_v8  ;;  %v1387_v8 = vld [vmem:[%s2037_s12] ss:$0 sm:$0xff] }
 0x65c   : > { %1521 = vmatpush3.bf16.msra.mxu1 %v1588_v37 }
 0x6ff   : > { %v1066_v6 = vpop.f32.mrf.mxu1 }
 0x700   : > { %v1067_v7 = vadd.f32 %v1377_v5, %v1066_v6 }
 0x701   : > { %v1496_v9 = vpop.f32.mrf.mxu1 }
 0x702   : > { %v1920_v10 = vadd.f32 %v1067_v7, %v1805_v0  ;;  %v1580_v0 = vld [vmem:[%s2034_s9] sm:$0xff]  }
 0x703   : > { %v1069_v11 = vpop.f32.mrf.mxu1  ;;  %1501 = vmatpush3.bf16.msra.mxu0 %v1580_v0 }
 0x704   : > { %v1073_v12 = vsel %vm438_vm0, %v1920_v10, 0.0 }
 0x705   : > { %1074 = vadd.xlane.f32.xlu1 %v1073_v12  ;;  %v1497_v13 = vpop.f32.mrf.mxu1 }
 0x78e   : > { %v1075_v14 = vpop.xlane.xlu1 %1074 }
 0x78f   : > { %v1076_v15 = vmul.f32 0.03125, %v1075_v14 }
 0x791   : > { %v1077_v16 = vsub.f32 %v1920_v10, %v1076_v15 }
 0x793   : > { %v1078_v17 = vmul.f32 %v1077_v16, %v1077_v16 }
 0x795   : > { %v1079_v18 = vsel %vm438_vm0, %v1078_v17, 0.0 }
 0x796   : > { %1080 = vadd.xlane.f32.xlu0 %v1079_v18 }
 0x81f   : > { %v1081_v26 = vpop.xlane.xlu0 %1080 }
 0x820   : > { %v1082_v27 = vmul.f32 0.03125, %v1081_v26 }
 0x822   : > { %v1083_v29 = vadd.f32 1e-05, %v1082_v27 }
 0x824   : > { %1607 = vrsqrt.f32 %v1083_v29 }
 0x831   : > { %v1608_v30 = vpop.eup %1607 }
 0x832   : > { %v1085_v31 = vmul.f32 %v1608_v30, %v1077_v16 }
 0x834   : > { %v1093_v33 = vmul.f32 %v1381_v28, %v1085_v31 }
 0x836   : > { %v1101_v34 = vadd.f32 %v1382_v32, %v1093_v33 }
 0x838   : > { %v1102_v35 = vpack.c.bf16 %v1101_v34, %v1101_v34 }
 0x83a   : > { %1503 = vmatmul.mubr.msk.bf16.vlgmr.msra.gmra.mxu0 %vm438_vm0, %v1102_v35 }
 0x8fa   : > { %v1163_v39 = vpop.f32.mrf.mxu0 }
 0x8fb   : > { %v1164_v40 = vadd.f32 %v1383_v38, %v1163_v39 }
 0x8fc   : > { %v1504_v41 = vpop.f32.mrf.mxu0 }
 0x8fd   : > { %v1169_v42 = vmax.f32 %v1164_v40, 0.0 }
 0x8fe   : > { %v1166_v43 = vpop.f32.mrf.mxu0 }
 0x8ff   : > { %v1170_v44 = vpack.c.bf16 %v1169_v42, %v1169_v42 }
 0x900   : > { %v1505_v45 = vpop.f32.mrf.mxu0 }
 0x901   : > { %1523 = vmatmul.mubr.bf16.vlgmr.msra.gmra.mxu1 %v1170_v44 }
 0x9c1   : > { %v1276_v46 = vpop.f32.mrf.mxu1 }
 0x9c2   : > { %v1277_v47 = vadd.f32 %v1387_v8, %v1276_v46 }
 0x9c3   : > { %v1524_v48 = vpop.f32.mrf.mxu1 }
 0x9c4   : > { %v1282_v49 = vadd.f32 %v1277_v47, %v1920_v10 }
 0x9c5   : > { %v1279_v50 = vpop.f32.mrf.mxu1 }
 0x9c6   : > { %1283 = vst.msk [vmem:[%s431_s24] sm:$0xff] %vm438_vm0, %v1282_v49 }
 0x9c7   : > { %v1525_v51 = vpop.f32.mrf.mxu1 }
 0x9c8   : > { %1622 = shalt.err (!%p1619_p3)
}
 0x9c9   : > { %s1623_s23 = scalar_lea.hbm %s1983_s1, 128  ;;  %s1627_s15 = scalar_lea.hbm %s2038_s13, 256 }
 0x9ca   : > { %p1624_p4 = scmp.ne.s32.totalorder %s1983_s1, %s1623_s23  ;;  %p1628_p9 = scmp.lt.s32.totalorder %s1983_s1, %s2038_s13 }
 0x9cb   : > { %p1629_p10 = scmp.lt.s32.totalorder %s1627_s15, %s1623_s23 }
 0x9cc   : > { %p1625_p7 = pnand %p1624_p4, %p1790_p5 }
 0x9cd   : > { %p1630_p11 = por %p1629_p10, %p1628_p9 }
 0x9ce   : > { %p1626_p8 = pneg %p1625_p7 }
 0x9d0   : > { %p1631_p12 = pnand %p1630_p11, %p1626_p8 }
 0x9d2   : > { %1634 = shalt.err (!%p1631_p12)
}
 0x9d3   : > { %1526 = dma.vmem_to_hbm [thread:$0]  (%p1790_p5), %s1985_s30, 128, %s1983_s1, %s1285_s29  }
 0x9d4 PF: > { %p1532_p13 = scmp.ge.s32.totalorder %s1669_s28, 2  ;;  %s1310_s20 = sand.u32 1, %s1657_s25  }
 0x9d5   : > { %s1311_s2 = scalar_lea.sflag [#allocation3], %s1310_s20 }
 0x9d6   : > { %p1529_p0 = pnand %p1532_p13, %p1794_p6 }
 0x9d8   : > { %p1530_p1 = pneg %p1529_p0 }
 0x9da   : > { %1652 = dma.done.wait (%p1530_p1), %s1311_s2, 128  }
 0x9db   : > { %1654 = vsyncadd (%p1530_p1), %s1311_s2, 4294967168  ;;  %p23_p2 = scmp.ge.s32.totalorder %s1777_s14, 4   ;;  %s2047_s25 = smov %s1661_s26 }
 0x9dc   : > { %s2048_s26 = smov %s1665_s27  ;;  %s2049_s27 = smov %s1788_s17 }
 0x9dd   : > { %s2050_s28 = smov %s1777_s14  ;;  %25 = sbr.rel (!%p23_p2) target bundleno = 7 (0x7), region = 107 }
 0x9e2   :  { %1316 = vsyncpa [#allocation3], 1 }
 0x9e3   :  { %1318 = vsyncpa [#allocation3 + $0x1], 1 }

</bundles_post_ra>
